<compile_context>
chip_gen: v7x
topology: tpu7x:2x2x1
jax: 0.10.0
libtpu: 0.0.40
codegen_flags: <defaults>
</compile_context>

<pallas_src>
import functools

import jax
import jax.numpy as jnp
from jax.experimental import pallas as pl
from jax.experimental.pallas import tpu as pltpu


def _rotary_packed_kernel(coord_ref, e_ref, out_ref, *, group):
    # coord_ref: (TR, group)      -- `group` consecutive points per output lane-row
    # e_ref:     (group, group*dim) -- block-diagonal, pre-scaled, pre-duplicated inv_freq
    # out_ref:   (TR, group*dim)  -- lane-dense output block (multiple of 128 lanes
    #                                whenever dim divides 128)
    c = coord_ref[...]
    e = e_ref[...]
    # out[r, l] = c[r, l // dim] * invf2_scaled[l % dim]  ==  sum_i c[:, i] * E[i, :]
    acc = c[:, 0:1] * e[0:1, :]
    for i in range(1, group):
        acc = acc + c[:, i : i + 1] * e[i : i + 1, :]
    out_ref[...] = acc.astype(out_ref.dtype)


def rotary_embedding_2d_forward(coordinates, inv_freq, *, min_freq=1.0 / 64,
                                scale=1.0, tile_rows=1024):
    """coordinates: [B, N] float; inv_freq: [dim//2] float. Returns [B, N, dim]."""
    B, N = coordinates.shape
    half = inv_freq.shape[0]
    dim = 2 * half
    dtype = coordinates.dtype
    mult = scale / min_freq

    # Fold the coordinate scale and the cat((freqs, freqs)) into the frequency table.
    invf2 = (jnp.concatenate([inv_freq, inv_freq]) * mult).astype(dtype)  # (dim,)

    total = B * N
    # Pack `group` consecutive points per lane-row so the output lane width is a
    # multiple of 128 (lane-dense stores).  Fall back to one point per row otherwise.
    if dim <= 128 and 128 % dim == 0 and total % (128 // dim) == 0:
        group = 128 // dim
    else:
        group = 1  # TODO(synk): dims not dividing 128 keep dim on lanes (masked stores)
    lane = group * dim
    rows = total // group

    # E[i, i*dim:(i+1)*dim] = invf2, zero elsewhere (block-diagonal replication table).
    e_table = jnp.kron(jnp.eye(group, dtype=dtype), invf2.reshape(1, dim))  # (group, lane)

    coords2 = coordinates.reshape(rows, group)  # zero-cost row-major reshape

    tr = int(min(tile_rows, rows))
    if tr < rows:
        tr = max(8, (tr // 8) * 8)  # keep sublane block dim a multiple of 8 when tiling
    grid = (pl.cdiv(rows, tr),)

    kernel = functools.partial(_rotary_packed_kernel, group=group)
    out_flat = pl.pallas_call(
        kernel,
        out_shape=jax.ShapeDtypeStruct((rows, lane), dtype),
        grid=grid,
        in_specs=[
            pl.BlockSpec((tr, group), lambda r: (r, 0)),
            pl.BlockSpec((group, lane), lambda r: (0, 0)),
        ],
        out_specs=pl.BlockSpec((tr, lane), lambda r: (r, 0)),
        compiler_params=pltpu.CompilerParams(
            dimension_semantics=("parallel",),
            vmem_limit_bytes=32 * 1024 * 1024,
        ),
    )(coords2, e_table)

    return out_flat.reshape(B, N, dim)  # zero-cost reshape back to reference layout


def _reference_forward(coordinates, inv_freq, *, min_freq=1.0 / 64, scale=1.0):
    c = coordinates * (scale / min_freq)
    freqs = jnp.einsum("bi,j->bij", c, inv_freq)
    return jnp.concatenate([freqs, freqs], axis=-1)


if __name__ == "__main__":
    # Module config (deterministic init, matches __init__):
    dim = 32
    min_freq = 1.0 / 64
    scale = 1.0
    inv_freq = 1.0 / (10000.0 ** (jnp.arange(0, dim, 2, dtype=jnp.float32) / dim))  # (dim//2,)

    # Small deterministic input: coordinates [batch_size, num_points]
    key = jax.random.PRNGKey(0)
    B, N = 2, 16
    coordinates = jax.random.uniform(key, (B, N), dtype=jnp.float32)

    out = rotary_embedding_2d_forward(coordinates, inv_freq, min_freq=min_freq, scale=scale)
    out = jax.block_until_ready(out)

    ref = _reference_forward(coordinates, inv_freq, min_freq=min_freq, scale=scale)
    assert out.shape == (B, N, dim), out.shape
    assert jnp.allclose(out, ref, atol=1e-5, rtol=1e-5), "mismatch vs reference"

    print("KERNEL_OK")
</pallas_src>

<mosaic_0001>
module attributes {stable_mosaic.version = 11 : i64} {
  func.func @_rotary_packed_kernel(%arg0: i32, %arg1: memref<8x4xf32, #tpu.memory_space<vmem>>, %arg2: memref<4x128xf32, #tpu.memory_space<vmem>>, %arg3: memref<8x128xf32, #tpu.memory_space<vmem>>) attributes {dimension_semantics = [#tpu.dimension_semantics<parallel>], iteration_bounds = array<i64: 1>, scalar_prefetch = 0 : i64, scratch_operands = 0 : i64, tpu.core_type = #tpu.core_type<tc>, window_params = [{transform_indices = @transform_0, window_bounds = array<i64: 8, 4>}, {pipeline_mode = #tpu.pipeline_mode<synchronous>, transform_indices = @transform_1, window_bounds = array<i64: 4, 128>}, {transform_indices = @transform_2, window_bounds = array<i64: 8, 128>}]} {
    %c0 = arith.constant 0 : index
    %c0_0 = arith.constant 0 : index
    %0 = vector.load %arg1[%c0, %c0_0] : memref<8x4xf32, #tpu.memory_space<vmem>>, vector<8x4xf32>
    %c0_1 = arith.constant 0 : index
    %c0_2 = arith.constant 0 : index
    %1 = vector.load %arg2[%c0_1, %c0_2] : memref<4x128xf32, #tpu.memory_space<vmem>>, vector<4x128xf32>
    %2 = vector.extract_strided_slice %0 {offsets = [0, 0], sizes = [8, 1], strides = [1, 1]} : vector<8x4xf32> to vector<8x1xf32>
    %3 = vector.extract_strided_slice %1 {offsets = [0, 0], sizes = [1, 128], strides = [1, 1]} : vector<4x128xf32> to vector<1x128xf32>
    %4 = vector.broadcast %2 : vector<8x1xf32> to vector<8x128xf32>
    %5 = vector.broadcast %3 : vector<1x128xf32> to vector<8x128xf32>
    %6 = arith.mulf %4, %5 : vector<8x128xf32>
    %7 = vector.extract_strided_slice %0 {offsets = [0, 1], sizes = [8, 1], strides = [1, 1]} : vector<8x4xf32> to vector<8x1xf32>
    %8 = vector.extract_strided_slice %1 {offsets = [1, 0], sizes = [1, 128], strides = [1, 1]} : vector<4x128xf32> to vector<1x128xf32>
    %9 = vector.broadcast %7 : vector<8x1xf32> to vector<8x128xf32>
    %10 = vector.broadcast %8 : vector<1x128xf32> to vector<8x128xf32>
    %11 = arith.mulf %9, %10 : vector<8x128xf32>
    %12 = arith.addf %6, %11 : vector<8x128xf32>
    %13 = vector.extract_strided_slice %0 {offsets = [0, 2], sizes = [8, 1], strides = [1, 1]} : vector<8x4xf32> to vector<8x1xf32>
    %14 = vector.extract_strided_slice %1 {offsets = [2, 0], sizes = [1, 128], strides = [1, 1]} : vector<4x128xf32> to vector<1x128xf32>
    %15 = vector.broadcast %13 : vector<8x1xf32> to vector<8x128xf32>
    %16 = vector.broadcast %14 : vector<1x128xf32> to vector<8x128xf32>
    %17 = arith.mulf %15, %16 : vector<8x128xf32>
    %18 = arith.addf %12, %17 : vector<8x128xf32>
    %19 = vector.extract_strided_slice %0 {offsets = [0, 3], sizes = [8, 1], strides = [1, 1]} : vector<8x4xf32> to vector<8x1xf32>
    %20 = vector.extract_strided_slice %1 {offsets = [3, 0], sizes = [1, 128], strides = [1, 1]} : vector<4x128xf32> to vector<1x128xf32>
    %21 = vector.broadcast %19 : vector<8x1xf32> to vector<8x128xf32>
    %22 = vector.broadcast %20 : vector<1x128xf32> to vector<8x128xf32>
    %23 = arith.mulf %21, %22 : vector<8x128xf32>
    %24 = arith.addf %18, %23 : vector<8x128xf32>
    %c0_3 = arith.constant 0 : index
    %c0_4 = arith.constant 0 : index
    %25 = vector.load %arg3[%c0_3, %c0_4] : memref<8x128xf32, #tpu.memory_space<vmem>>, vector<8x128xf32>
    tpu.vector_store %arg3[%c0_3, %c0_4], %24 {strides = array<i32>} : memref<8x128xf32, #tpu.memory_space<vmem>>, vector<8x128xf32>,
    return
  }
  func.func @transform_0(%arg0: i32) -> (i32, i32) {
    %c0_i32 = arith.constant 0 : i32
    %c0_i32_0 = arith.constant 0 : i32
    return %arg0, %c0_i32 : i32, i32
  }
  func.func @transform_1(%arg0: i32) -> (i32, i32) {
    %c0_i32 = arith.constant 0 : i32
    %c0_i32_0 = arith.constant 0 : i32
    %c0_i32_1 = arith.constant 0 : i32
    return %c0_i32, %c0_i32_0 : i32, i32
  }
  func.func @transform_2(%arg0: i32) -> (i32, i32) {
    %c0_i32 = arith.constant 0 : i32
    %c0_i32_0 = arith.constant 0 : i32
    return %arg0, %c0_i32 : i32, i32
  }
}

</mosaic_0001>

<bundles_post_ra>
// kernel: tpu_custom_call.1
= control target key start
LH: loop header
LB: loop body
LE: loop exit
PB: predicated region body
PF: predicated region fallthrough
CT: control target
= control target key end

     0   :  { %v103_v1 = vmov 0   ;;  %v104_v2 = vmov 2   ;;  %s141_s0 = inlined_call_operand.vmem [shape: f32[8,4], index: 0, kind: input, shape index: {}]   ;;  %s142_s1 = inlined_call_operand.vmem [shape: f32[4,128], index: 1, kind: input, shape index: {}]   ;;  %s143_s2 = inlined_call_operand.hbm [shape: f32[8,128], index: 2, kind: output, shape index: {}]  }
   0x1   :  { %v12_v0 = vld [vmem:[%s141_s0] sm:$0xff]  ;;  %74 = vset.pattern.permute.xlu0 %v103_v1  ;;  %76 = vset.pattern.permute.xlu1 %v104_v2 }
   0x2   :  { %7 = vsyncpa [#allocation3], 0  ;;  %16 = vperm.xlu0 %74, %v12_v0   ;;  %35 = vperm.xlu1 %76, %v12_v0   ;;  %v105_v3 = vmov 1   ;;  %v106_v4 = vmov 3   ;;  %v19_v5 = vlaneseq  ;;  %v13_v9 = vld [vmem:[%s142_s1] sm:$0xf] }
   0x3   :  { %s107_s12 = smov [#allocation2]  }
   0x4   :  { %v20_v6 = vshrl.u32 %v19_v5, 7  ;;  %s61_s13 = sshll.u32 %s107_s12, 4  ;;  %s62_s13 = int_to_ptr.vmem [resolvable:$true] %s61_s13 }
   0x5   :  { %s79_s1 = scalar_lea.vmem %s62_s13, 128  ;;  %p84_p1 = scmp.lt.s32.totalorder %s62_s13, %s62_s13 }
   0x6   :  { %75 = vset.pattern.permute.xlu0 %v105_v3  ;;  %77 = vset.pattern.permute.xlu1 %v106_v4  ;;  %v21_v7 = vsub.s32 0, %v20_v6  ;;  %v30_v8 = vsub.s32 1, %v20_v6  ;;  %v40_v11 = vsub.s32 2, %v20_v6  ;;  %v50_v13 = vsub.s32 3, %v20_v6  ;;  %p80_p0 = scmp.ne.s32.totalorder %s62_s13, %s79_s1  ;;  %p85_p2 = scmp.lt.s32.totalorder %s79_s1, %s79_s1 }
   0x7   :  { %25 = vperm.xlu0 %75, %v12_v0   ;;  %45 = vperm.xlu1 %77, %v12_v0  }
   0x8   :  { %v22_v14 = vrot.slane %v13_v9, %v21_v7  ;;  %v31_v15 = vrot.slane %v13_v9, %v30_v8  ;;  %v41_v16 = vrot.slane %v13_v9, %v40_v11  ;;  %v51_v17 = vrot.slane %v13_v9, %v50_v13  ;;  %p86_p3 = por %p85_p2, %p84_p1 }
   0xa   :  { %p87_p4 = pnand %p86_p3, %p80_p0 }
   0xb   :  { %78 = vset.pattern.permute.xlu0 %v106_v4 }
  0x81   :  { %v17_v10 = vpop.permute.xlu0 %16  ;;  %v36_v12 = vpop.permute.xlu1 %35 }
  0x82   :  { %v23_v20 = vmul.f32 %v22_v14, %v17_v10  ;;  %v42_v22 = vmul.f32 %v41_v16, %v36_v12 }
  0x86   :  { %v26_v18 = vpop.permute.xlu0 %25  ;;  %v46_v19 = vpop.permute.xlu1 %45 }
  0x87   :  { %v32_v21 = vmul.f32 %v31_v15, %v26_v18  ;;  %v52_v24 = vmul.f32 %v51_v17, %v46_v19 }
  0x89   :  { %v33_v23 = vadd.f32 %v32_v21, %v23_v20 }
  0x8b   :  { %v43_v25 = vadd.f32 %v42_v22, %v33_v23 }
  0x8d   :  { %v53_v26 = vadd.f32 %v52_v24, %v43_v25 }
  0x8f   :  { %54 = vst [vmem:[#allocation2] sm:$0xff] %v53_v26 }
  0x90   :  { %90 = shalt.err (!%p87_p4)
}
  0x91   :  { %s91_s16 = scalar_lea.hbm %s143_s2, 128 }
  0x92   :  { %p92_p5 = scmp.ne.s32.totalorder %s143_s2, %s91_s16  ;;  %p95_p6 = scmp.lt.u32.totalorder %s91_s16, %s143_s2 }
  0x94   :  { %p97_p7 = pnand %p95_p6, %p92_p5 }
  0x96   :  { %100 = shalt.err (!%p97_p7)
}
  0x97   :  { %64 = dma.vmem_to_hbm [thread:$0]  %s62_s13, 128, %s143_s2, [#allocation3]  }
  0x98   :  { %101 = dma.done.wait [#allocation3], 128  }
  0x99   :  { %102 = vsyncadd [#allocation3], 4294967168 }
  0x9a   :  { %68 = vsyncpa [#allocation3], 1 }

</bundles_post_ra>
